<compile_context>
chip_gen: v7x
topology: tpu7x:2x2x1
jax: 0.10.0
libtpu: 0.0.40
codegen_flags: <defaults>
</compile_context>

<pallas_src>
import functools
import math

import jax
import jax.numpy as jnp
from jax import lax
from jax.experimental import pallas as pl
from jax.experimental.pallas import tpu as pltpu


# --------------------------- call 1: logits + softmax ---------------------------
def _gating_kernel(x_ref, w_ref, gates_ref):
    x = x_ref[...]                                     # (TG, M) f32 or bf16
    w = w_ref[...]                                     # (M, E)
    logits = jnp.dot(x, w, preferred_element_type=jnp.float32)   # MXU, (TG, E)
    m = jnp.max(logits, axis=1, keepdims=True)
    ex = jnp.exp(logits - m)
    denom = jnp.sum(ex, axis=1, keepdims=True)
    gates_ref[...] = ex * pl.reciprocal(denom, approx=False)


# ------------- call 2: top-1 routing, aux loss, RTS capacity drop ---------------
def _routing_kernel(gates_ref, u_ref, laux_ref, counts_ref, mgates_ref, off_ref,
                    *, S, E, C, TD, TDN):
    gates = gates_ref[...]                             # (S, E) f32
    e_iota = lax.broadcasted_iota(jnp.int32, (S, E), 1)
    s_iota = lax.broadcasted_iota(jnp.int32, (S, E), 0)

    # top-1 (ties -> lowest expert index, matching argmax)
    rowmax = jnp.max(gates, axis=1, keepdims=True)
    idx1 = jnp.min(jnp.where(gates == rowmax, e_iota, E), axis=1, keepdims=True)
    mask1 = (e_iota == idx1).astype(jnp.float32)       # (S, E) one-hot

    # pre-drop expert counts + aux load-balancing loss
    counts_ref[...] = jnp.sum(mask1, axis=0, keepdims=True).astype(jnp.int32)
    me = jnp.mean(gates, axis=0, keepdims=True)
    ce = jnp.mean(mask1, axis=0, keepdims=True)
    laux_ref[...] = jnp.reshape(jnp.sum(me * ce) * float(E), (1, 1))

    # Random Token Selection: keep the top-C tokens per expert column of
    # mr = mask1 * u, ties broken by lowest token index (== lax.top_k order).
    # Binary search on the int bit pattern of mr (monotone, mr >= 0): find the
    # per-column threshold in ~32 steps instead of C serial max/mask passes.
    mr = mask1 * u_ref[...]                            # (S, E) in [0, 1)
    mr_bits = pltpu.bitcast(mr, jnp.int32)

    lo = jnp.full((1, E), -1, jnp.int32)
    hi = jnp.full((1, E), 0x3F800000, jnp.int32)       # > bits of any f32 in [0,1)

    def val_step(_, carry):
        lo, hi = carry
        mid = lo + ((hi - lo) >> 1)
        cnt = jnp.sum(jnp.where(mr_bits > mid, 1.0, 0.0), axis=0, keepdims=True)
        pred = cnt < float(C)                          # thr <= mid ?
        return jnp.where(pred, lo, mid + 1), jnp.where(pred, mid, hi)

    lo, hi = lax.fori_loop(0, 32, val_step, (lo, hi))
    thr = hi                                           # (1, E) C-th largest bits

    gt = mr_bits > thr                                 # strictly above threshold
    eq = mr_bits == thr                                # candidates for last slots
    cnt_gt = jnp.sum(jnp.where(gt, 1.0, 0.0), axis=0, keepdims=True)
    needed = float(C) - cnt_gt                         # (1, E), in [1, C]

    # second search (tie-break): keep the `needed` lowest-index eq tokens
    lo = jnp.zeros((1, E), jnp.int32)
    hi = jnp.full((1, E), S, jnp.int32)

    def idx_step(_, carry):
        lo, hi = carry
        mid = lo + ((hi - lo) >> 1)
        cnt = jnp.sum(jnp.where(eq & (s_iota <= mid), 1.0, 0.0),
                      axis=0, keepdims=True)
        pred = cnt >= needed
        return jnp.where(pred, lo, mid + 1), jnp.where(pred, mid, hi)

    n_idx_iters = int(math.ceil(math.log2(S + 1))) + 1
    lo, hi = lax.fori_loop(0, n_idx_iters, idx_step, (lo, hi))
    idx_thr = hi                                       # (1, E)

    keep = jnp.where(gt | (eq & (s_iota <= idx_thr)), 1.0, 0.0)
    new_mask1 = mask1 * keep                           # post-drop assignments
    mgates_ref[...] = gates * new_mask1                # kept-mask == (mgates > 0)

    # exclusive per-dispatch-tile prefix counts: off[t, e] = sum_{s < t*TD} new_mask1
    # (removes the sequential offset carry so the dispatch grid can be parallel)
    t_iota = lax.broadcasted_iota(jnp.int32, (TDN, S), 0)
    c_iota = lax.broadcasted_iota(jnp.int32, (TDN, S), 1)
    offmat = (c_iota < t_iota * TD).astype(jnp.float32)
    off_ref[...] = jnp.dot(offmat, new_mask1, preferred_element_type=jnp.float32)


# ------------------ call 3: locations + combine/dispatch tiles ------------------
def _dispatch_kernel(mg_ref, off_ref, combine_ref, dispatch_ref, *, E, C, TD):
    t = pl.program_id(0)
    gm = mg_ref[...]                                   # (TD, E) gates * new_mask1
    nm = (gm > 0.0).astype(jnp.float32)                # kept one-hot (no scratch)

    # cumsum(new_mask1) - 1 restricted to this tile: small triangular matmul
    # plus the precomputed prior-tile offsets.
    r_i = lax.broadcasted_iota(jnp.int32, (TD, TD), 0)
    r_j = lax.broadcasted_iota(jnp.int32, (TD, TD), 1)
    tri = (r_j <= r_i).astype(jnp.float32)
    off = off_ref[pl.ds(t, 1), :]                      # (1, E)
    loc = jnp.dot(tri, nm, preferred_element_type=jnp.float32) - 1.0 + off

    loc_s = jnp.sum(loc * nm, axis=1, keepdims=True)                 # (TD, 1)
    e_iota = lax.broadcasted_iota(jnp.float32, (TD, E), 1)
    sel_e = jnp.sum(e_iota * nm, axis=1, keepdims=True)              # (TD, 1)
    gate_sel = jnp.sum(gm, axis=1, keepdims=True)                    # (TD, 1)

    # combine[s, e*C + c] = gate_sel[s] at e = sel_e[s], c = loc_s[s]; else 0.
    # Dropped tokens get target = -1 -> all-zero row for both outputs.
    target = jnp.where(gate_sel > 0.0, sel_e * float(C) + loc_s, -1.0)
    col = lax.broadcasted_iota(jnp.float32, (TD, E * C), 1)
    onehot = col == target
    combine_ref[...] = jnp.where(onehot, gate_sel, 0.0).astype(combine_ref.dtype)
    dispatch_ref[...] = onehot.astype(jnp.int8)


def _pick_tile(S, target):
    """Largest token tile <= target that divides S (prefer multiples of 32)."""
    target = max(8, target - target % 8)
    if S % 32 == 0:
        ts = min(max(32, target - target % 32), S)
        while S % ts:
            ts -= 32
        return ts
    if S % 8 == 0:
        ts = min(target, S)
        while S % ts:
            ts -= 8
        return ts
    return S


def topk_gate_forward(x, weight, u, *, capacity_factor=1.0, min_capacity=8,
                      gate_tile_tokens=512, dispatch_tile_tokens=256,
                      combine_dtype=jnp.float32):
    """Pallas TopKGate (k=1) forward.

    x:      (S, M) tokens (f32 for exact module parity; bf16 halves the HBM read)
    weight: (E, M) wg.weight (Linear, no bias)
    u:      (S, E) uniform(0,1) draws for Random Token Selection
    returns (l_aux, combine_weights (S,E,C), dispatch_mask bool (S,E,C), exp_counts (E,))
    """
    S, M = x.shape
    E = weight.shape[0]
    C = max(int(math.ceil(S / E * capacity_factor)), int(min_capacity))
    assert S >= min_capacity, "No. of tokens should be >= min_capacity."
    assert E * C < (1 << 24), "combine one-hot uses exact f32 column indices"

    # gating tile: keep 2 double-buffered (TG, M) x tiles within ~16 MiB
    xbytes = jnp.dtype(x.dtype).itemsize
    max_tg = max(8, (16 * 1024 * 1024) // max(1, 2 * M * xbytes))
    TG = _pick_tile(S, min(gate_tile_tokens, max_tg))
    # dispatch tile: keep 2 double-buffered (TD, E*C) f32+i8 tiles within ~16 MiB
    max_td = max(8, (16 * 1024 * 1024) // max(1, 10 * E * C))
    TD = _pick_tile(S, min(dispatch_tile_tokens, max_td))
    TGN, TDN = S // TG, S // TD

    w_t = jnp.transpose(weight).astype(x.dtype)        # (M, E), matches x dtype
    u = u.astype(jnp.float32)

    # ---------------- call 1: gating (parallel over token tiles) -----------------
    gates = pl.pallas_call(
        _gating_kernel,
        grid=(TGN,),
        in_specs=[pl.BlockSpec((TG, M), lambda t: (t, 0)),
                  pl.BlockSpec((M, E), lambda t: (0, 0))],
        out_specs=pl.BlockSpec((TG, E), lambda t: (t, 0)),
        out_shape=jax.ShapeDtypeStruct((S, E), jnp.float32),
        compiler_params=pltpu.CompilerParams(
            dimension_semantics=("parallel",),
            vmem_limit_bytes=32 * 1024 * 1024),
    )(x, w_t)

    # ---------------- call 2: routing on the full (S, E) state -------------------
    # TODO(synk): pipeline_mode=pl.Buffered(1) on the constant-index inputs would
    #             single-buffer them and halve their VMEM footprint.
    routing_kernel = functools.partial(_routing_kernel, S=S, E=E, C=C, TD=TD, TDN=TDN)
    l_aux, counts, mgates, offsets = pl.pallas_call(
        routing_kernel,
        grid=(1,),
        in_specs=[pl.BlockSpec((S, E), lambda i: (0, 0)),      # gates
                  pl.BlockSpec((S, E), lambda i: (0, 0))],     # RTS uniforms
        out_specs=(pl.BlockSpec((1, 1), lambda i: (0, 0)),     # l_aux
                   pl.BlockSpec((1, E), lambda i: (0, 0)),     # exp_counts
                   pl.BlockSpec((S, E), lambda i: (0, 0)),     # masked gates
                   pl.BlockSpec((TDN, E), lambda i: (0, 0))),  # per-tile offsets
        out_shape=(jax.ShapeDtypeStruct((1, 1), jnp.float32),
                   jax.ShapeDtypeStruct((1, E), jnp.int32),
                   jax.ShapeDtypeStruct((S, E), jnp.float32),
                   jax.ShapeDtypeStruct((TDN, E), jnp.float32)),
        compiler_params=pltpu.CompilerParams(
            dimension_semantics=("arbitrary",),
            vmem_limit_bytes=32 * 1024 * 1024),
    )(gates, u)

    # ---------------- call 3: dispatch (parallel over token tiles) ---------------
    dispatch_kernel = functools.partial(_dispatch_kernel, E=E, C=C, TD=TD)
    combine2, dispatch2 = pl.pallas_call(
        dispatch_kernel,
        grid=(TDN,),
        in_specs=[pl.BlockSpec((TD, E), lambda t: (t, 0)),     # masked gates tile
                  pl.BlockSpec((TDN, E), lambda t: (0, 0))],   # offsets (resident)
        out_specs=(pl.BlockSpec((TD, E * C), lambda t: (t, 0)),
                   pl.BlockSpec((TD, E * C), lambda t: (t, 0))),
        out_shape=(jax.ShapeDtypeStruct((S, E * C), combine_dtype),
                   jax.ShapeDtypeStruct((S, E * C), jnp.int8)),
        compiler_params=pltpu.CompilerParams(
            dimension_semantics=("parallel",),
            vmem_limit_bytes=32 * 1024 * 1024),
    )(mgates, offsets)

    combine = combine2.reshape(S, E, C)                # free row-major reshape
    dispatch_mask = dispatch2.reshape(S, E, C).astype(jnp.bool_)
    return l_aux[0, 0], combine, dispatch_mask, counts[0]


def topk_gate_reference(x, weight, u, *, capacity_factor=1.0, min_capacity=8):
    """Pure-JAX reference mirroring DeepSpeed top1gating (same uniform draws)."""
    S, M = x.shape
    E = weight.shape[0]
    C = max(int(math.ceil(S / E * capacity_factor)), int(min_capacity))
    logits = jnp.dot(x, weight.T.astype(x.dtype), preferred_element_type=jnp.float32)
    gates = jax.nn.softmax(logits.astype(jnp.float32), axis=1)
    idx1 = jnp.argmax(gates, axis=1)
    mask1 = jax.nn.one_hot(idx1, E, dtype=jnp.float32)
    exp_counts = jnp.sum(mask1, axis=0).astype(jnp.int32)
    me = jnp.mean(gates, axis=0)
    ce = jnp.mean(mask1, axis=0)
    l_aux = jnp.sum(me * ce) * E
    mr = mask1 * u
    top_idx = jax.lax.top_k(mr.T, C)[1]          # (E, C) token indices per expert
    sel = jnp.zeros((S, E), jnp.float32)
    for e in range(E):
        sel = sel.at[top_idx[e], e].set(1.0)
    new_mask1 = mask1 * sel
    locations1 = jnp.cumsum(new_mask1, axis=0) - 1.0
    locations1_s = jnp.sum(locations1 * new_mask1, axis=1)
    gates_m = gates * new_mask1
    loc_sc = jax.nn.one_hot(locations1_s.astype(jnp.int32), C, dtype=jnp.float32)
    combine = gates_m[:, :, None] * loc_sc[:, None, :]
    return l_aux, combine, combine != 0.0, exp_counts


if __name__ == "__main__":
    S, M, E = 128, 64, 4                         # tokens, model_dim, num_experts
    capacity_factor, min_capacity = 1.0, 8       # -> capacity C = 32, E*C = 128

    key = jax.random.PRNGKey(0)
    k1, k2, k3 = jax.random.split(key, 3)
    x = jax.random.normal(k1, (S, M), jnp.float32)
    bound = 1.0 / math.sqrt(M)                   # Linear default-like uniform init
    weight = jax.random.uniform(k2, (E, M), jnp.float32, -bound, bound)
    u = jax.random.uniform(k3, (S, E), jnp.float32)   # RTS draws (replaces torch RNG)

    # ---- f32 path, multi-tile (4 gating x 4 dispatch tiles): exact parity ----
    l_aux, combine, dispatch, counts = topk_gate_forward(
        x, weight, u, capacity_factor=capacity_factor, min_capacity=min_capacity,
        gate_tile_tokens=32, dispatch_tile_tokens=32)
    jax.block_until_ready((l_aux, combine, dispatch, counts))

    rl, rc, rd, rcnt = topk_gate_reference(
        x, weight, u, capacity_factor=capacity_factor, min_capacity=min_capacity)
    assert jnp.allclose(l_aux, rl, atol=2e-5), (l_aux, rl)
    assert jnp.allclose(combine, rc, atol=2e-5)
    assert bool(jnp.all(dispatch == rd))
    assert bool(jnp.all(counts == rcnt))

    # ---- bf16 activation path + default (single) tiles ----
    xb = x.astype(jnp.bfloat16)
    lb, cb, db, cntb = topk_gate_forward(
        xb, weight, u, capacity_factor=capacity_factor, min_capacity=min_capacity)
    jax.block_until_ready((lb, cb, db, cntb))
    assert bool(jnp.isfinite(lb))
    assert cb.shape == rc.shape
    assert int(jnp.sum(cntb)) == S               # every token routed (pre-drop counts)

    print("KERNEL_OK")
</pallas_src>

<mosaic_0001>
module attributes {stable_mosaic.version = 11 : i64} {
  func.func @_gating_kernel(%arg0: i32, %arg1: memref<32x64xf32, #tpu.memory_space<vmem>>, %arg2: memref<64x4xf32, #tpu.memory_space<vmem>>, %arg3: memref<32x4xf32, #tpu.memory_space<vmem>>) attributes {dimension_semantics = [#tpu.dimension_semantics<parallel>], iteration_bounds = array<i64: 4>, scalar_prefetch = 0 : i64, scratch_operands = 0 : i64, tpu.core_type = #tpu.core_type<tc>, window_params = [{transform_indices = @transform_0, window_bounds = array<i64: 32, 64>}, {pipeline_mode = #tpu.pipeline_mode<synchronous>, transform_indices = @transform_1, window_bounds = array<i64: 64, 4>}, {transform_indices = @transform_2, window_bounds = array<i64: 32, 4>}]} {
    %c0 = arith.constant 0 : index
    %c0_0 = arith.constant 0 : index
    %0 = vector.load %arg1[%c0, %c0_0] : memref<32x64xf32, #tpu.memory_space<vmem>>, vector<32x64xf32>
    %c0_1 = arith.constant 0 : index
    %c0_2 = arith.constant 0 : index
    %1 = vector.load %arg2[%c0_1, %c0_2] : memref<64x4xf32, #tpu.memory_space<vmem>>, vector<64x4xf32>
    %cst = arith.constant dense<0.000000e+00> : vector<32x4xf32>
    %2 = tpu.matmul %0, %1, %cst {dimension_numbers = #tpu.dot_dimension_numbers<[1], [0], [0], [1], [0, 0, 1, 1], [], []>} : vector<32x64xf32>, vector<64x4xf32>, vector<32x4xf32> -> vector<32x4xf32>
    %cst_3 = arith.constant dense<0xFF800000> : vector<32xf32>
    %3 = vector.multi_reduction <maximumf>, %2, %cst_3 [1] : vector<32x4xf32> to vector<32xf32>
    %4 = vector.shape_cast %3 : vector<32xf32> to vector<32x1xf32>
    %5 = vector.broadcast %4 : vector<32x1xf32> to vector<32x4xf32>
    %6 = arith.subf %2, %5 : vector<32x4xf32>
    %7 = math.exp %6 : vector<32x4xf32>
    %cst_4 = arith.constant dense<0.000000e+00> : vector<32xf32>
    %8 = vector.multi_reduction <add>, %7, %cst_4 [1] : vector<32x4xf32> to vector<32xf32>
    %9 = vector.shape_cast %8 : vector<32xf32> to vector<32x1xf32>
    %10 = tpu.reciprocal %9 : vector<32x1xf32> -> vector<32x1xf32>
    %11 = vector.broadcast %10 : vector<32x1xf32> to vector<32x4xf32>
    %12 = arith.mulf %7, %11 : vector<32x4xf32>
    %c0_5 = arith.constant 0 : index
    %c0_6 = arith.constant 0 : index
    %13 = vector.load %arg3[%c0_5, %c0_6] : memref<32x4xf32, #tpu.memory_space<vmem>>, vector<32x4xf32>
    tpu.vector_store %arg3[%c0_5, %c0_6], %12 {strides = array<i32>} : memref<32x4xf32, #tpu.memory_space<vmem>>, vector<32x4xf32>,
    return
  }
  func.func @transform_0(%arg0: i32) -> (i32, i32) {
    %c0_i32 = arith.constant 0 : i32
    %c0_i32_0 = arith.constant 0 : i32
    return %arg0, %c0_i32 : i32, i32
  }
  func.func @transform_1(%arg0: i32) -> (i32, i32) {
    %c0_i32 = arith.constant 0 : i32
    %c0_i32_0 = arith.constant 0 : i32
    %c0_i32_1 = arith.constant 0 : i32
    return %c0_i32, %c0_i32_0 : i32, i32
  }
  func.func @transform_2(%arg0: i32) -> (i32, i32) {
    %c0_i32 = arith.constant 0 : i32
    %c0_i32_0 = arith.constant 0 : i32
    return %arg0, %c0_i32 : i32, i32
  }
}

</mosaic_0001>

<bundles_post_ra>
// kernel: tpu_custom_call.1
= control target key start
LH: loop header
LB: loop body
LE: loop exit
PB: predicated region body
PF: predicated region fallthrough
CT: control target
= control target key end

     0   :  { %s482_s9 = smov 0   ;;  %s546_s0 = inlined_call_operand.vmem [shape: f32[128,64], index: 0, kind: input, shape index: {}]   ;;  %s547_s1 = inlined_call_operand.vmem [shape: f32[64,4], index: 1, kind: input, shape index: {}]   ;;  %s548_s2 = inlined_call_operand.vmem [shape: f32[128,4], index: 2, kind: output, shape index: {}]  }
   0x1 LB: > { %s362_s10 = sadd.s32 4294967295, %s465_s9   ;;  %p366_p0 = scmp.ge.s32.totalorder %s465_s9, 1  ;;  %s465_s9 = sphi %s482_s9, %s12_s9  }
   0x2   : > { %p113_p1 = scmp.lt.s32.totalorder %s465_s9, 5 }
   0x4   : > { %p114_p2 = pnand %p366_p0, %p113_p1 }
   0x5   : > { %v151_v0 = vld [vmem:[%s547_s1] sm:$0xff] (!%p114_p2)  ;;  %v152_v1 = vld [vmem:[%s547_s1 + $0x8] sm:$0xff] (!%p114_p2)  ;;  %v153_v2 = vld [vmem:[%s547_s1 + $0x10] sm:$0xff] (!%p114_p2)  ;;  %s367_s17 = sshll.u32 (!%p114_p2), %s362_s10, 2  ;;  %vm159_vm0 = vcmask (!%p114_p2), 523264   ;;  %vm257_vm1 = vcmask (!%p114_p2), 31744  }
   0x6   : > { %117 = sbr.rel (%p114_p2) target bundleno = 561 (0x231), region = 28  ;;  %v411_v3 = vpack.c.bf16 (!%p114_p2), %v152_v1, %v151_v0  ;;  %v154_v4 = vld [vmem:[%s547_s1 + $0x18] sm:$0xff] (!%p114_p2)  ;;  %p136_p3 = scmp.lt.s32.totalorder (!%p114_p2), %s367_s17, 15  ;;  %v155_v6 = vld [vmem:[%s547_s1 + $0x20] sm:$0xff] (!%p114_p2)  ;;  %v156_v7 = vld [vmem:[%s547_s1 + $0x28] sm:$0xff] (!%p114_p2) }
   0x7   : > { %v415_v5 = vpack.c.bf16 (!%p114_p2), %v154_v4, %v153_v2  ;;  %v419_v8 = vpack.c.bf16 (!%p114_p2), %v156_v7, %v155_v6  ;;  %v157_v9 = vld [vmem:[%s547_s1 + $0x30] sm:$0xff] (!%p114_p2)  ;;  %v158_v10 = vld [vmem:[%s547_s1 + $0x38] sm:$0xff] (!%p114_p2) }
   0x8   : > { %412 = vmatprep.subr.bf16.mxu0 (!%p114_p2), %v411_v3  ;;  %427 = vmatprep.subr.bf16.mxu1 (!%p114_p2), %v411_v3  ;;  %v423_v13 = vpack.c.bf16 (!%p114_p2), %v158_v10, %v157_v9 }
   0x9   : > { %414 = vmatpush3.bf16.msra.mxu0 (!%p114_p2), %v411_v3  ;;  %431 = vmatpush3.bf16.msra.mxu1 (!%p114_p2), %v411_v3 }
   0xa   : > { %416 = vmatprep.subr.bf16.mxu0 (!%p114_p2), %v415_v5  ;;  %428 = vmatprep.subr.bf16.mxu1 (!%p114_p2), %v415_v5 }
   0xd   : > { %s550_s17 = smov (!%p136_p3, %s367_s17), 15  ;;  %418 = vmatpush3.bf16.msra.mxu0 %v415_v5  ;;  %432 = vmatpush3.bf16.msra.mxu1 %v415_v5 }
   0xe   : > { %s368_s24 = sshll.u32 %s550_s17, 3  ;;  %420 = vmatprep.subr.bf16.mxu0 %v419_v8  ;;  %429 = vmatprep.subr.bf16.mxu1 %v419_v8 }
   0xf   : > { %s139_s3 = scalar_lea.vmem %s546_s0, %s368_s24  ;;  %s145_s6 = scalar_lea.vmem %s548_s2, %s368_s24 }
  0x10   : > { %v147_v11 = vld [vmem:[%s139_s3] sm:$0xff]  ;;  %v149_v12 = vld [vmem:[%s139_s3 + $0x10] sm:$0xff]  ;;  %v148_v14 = vld [vmem:[%s139_s3 + $0x8] sm:$0xff] }
  0x11   : > { %405 = vmatprep.mubr.msk.f32.mxu0 %vm159_vm0, %v147_v11  ;;  %408 = vmatprep.mubr.msk.f32.mxu1 %vm159_vm0, %v149_v12  ;;  %v150_v15 = vld [vmem:[%s139_s3 + $0x18] sm:$0xff] }
  0x12   : > { %422 = vmatpush3.bf16.msra.mxu0 %v419_v8  ;;  %433 = vmatpush3.bf16.msra.mxu1 %v419_v8 }
  0x13   : > { %424 = vmatprep.subr.bf16.mxu0 %v423_v13  ;;  %430 = vmatprep.subr.bf16.mxu1 %v423_v13 }
  0x16   : > { %426 = vmatpush3.bf16.msra.mxu0 %v423_v13  ;;  %434 = vmatpush3.bf16.msra.mxu1 %v423_v13 }
  0x19   : > { %406 = vmatmul.mubr.msk.f32.vlgmr.msra.gmra.mrb[0].mxu0 %vm159_vm0, %v148_v14  ;;  %409 = vmatmul.mubr.msk.f32.vlgmr.msra.gmra.mrb[0].mxu1 %vm159_vm0, %v150_v15 }
  0xec   : > { %v407_v16 = vpop.f32.mrb[0].mxu0  ;;  %v410_v17 = vpop.f32.mrb[0].mxu1 }
  0xed   : > { %v238_v18 = vpop.f32.mrb[1].mxu0  ;;  %v248_v19 = vpop.f32.mrb[1].mxu1  ;;  %v267_v22 = vsel %vm257_vm1, %v410_v17, -inf  ;;  %v261_v23 = vsel %vm257_vm1, %v407_v16, -inf }
  0xee   : > { %v264_v20 = vsel %vm257_vm1, %v248_v19, -inf  ;;  %v258_v21 = vsel %vm257_vm1, %v238_v18, -inf }
  0xef   : > { %265 = vmax.xlane.f32.xlu1 %v264_v20  ;;  %259 = vmax.xlane.f32.xlu0 %v258_v21 }
  0xf3   : > { %268 = vmax.xlane.f32.xlu1 %v267_v22  ;;  %262 = vmax.xlane.f32.xlu0 %v261_v23 }
 0x17c   : > { %v266_v24 = vpop.xlane.xlu1 %265  ;;  %v260_v25 = vpop.xlane.xlu0 %259 }
 0x17d   : > { %v272_v26 = vsub.f32 %v248_v19, %v266_v24  ;;  %v270_v27 = vsub.f32 %v238_v18, %v260_v25 }
 0x17f   : > { %v274_v28 = vmul.f32 1.442695, %v270_v27  ;;  %v278_v29 = vmul.f32 1.442695, %v272_v26 }
 0x180   : > { %v269_v30 = vpop.xlane.xlu1 %268  ;;  %v263_v31 = vpop.xlane.xlu0 %262 }
 0x181   : > { %v273_v32 = vsub.f32 %v410_v17, %v269_v30  ;;  %v271_v33 = vsub.f32 %v407_v16, %v263_v31  ;;  %443 = vpow2.f32 %v274_v28 }
 0x182   : > { %445 = vpow2.f32 %v278_v29 }
 0x183   : > { %v276_v34 = vmul.f32 1.442695, %v271_v33  ;;  %v280_v35 = vmul.f32 1.442695, %v273_v32 }
 0x185   : > { %447 = vpow2.f32 %v276_v34 }
 0x186   : > { %449 = vpow2.f32 %v280_v35 }
 0x18b   : > { %v444_v36 = vpop.eup %443 }
 0x18c   : > { %v282_v37 = vsel %vm257_vm1, %v444_v36, 0.0  ;;  %v446_v38 = vpop.eup %445 }
 0x18d   : > { %283 = vadd.xlane.f32.xlu0 %v282_v37  ;;  %v288_v40 = vsel %vm257_vm1, %v446_v38, 0.0 }
 0x18f   : > { %v448_v39 = vpop.eup %447 }
 0x190   : > { %v285_v41 = vsel %vm257_vm1, %v448_v39, 0.0  ;;  %v450_v42 = vpop.eup %449 }
 0x191   : > { %289 = vadd.xlane.f32.xlu0 %v288_v40  ;;  %286 = vadd.xlane.f32.xlu1 %v285_v41  ;;  %v291_v43 = vsel %vm257_vm1, %v450_v42, 0.0 }
 0x195   : > { %292 = vadd.xlane.f32.xlu1 %v291_v43 }
 0x21a   : > { %v284_v44 = vpop.xlane.xlu0 %283 }
 0x21b   : > { %451 = vrcp.f32 %v284_v44 }
 0x21e   : > { %v287_v45 = vpop.xlane.xlu1 %286  ;;  %v290_v46 = vpop.xlane.xlu0 %289 }
 0x21f   : > { %453 = vrcp.f32 %v287_v45 }
 0x220   : > { %455 = vrcp.f32 %v290_v46 }
 0x222   : > { %v293_v47 = vpop.xlane.xlu1 %292 }
 0x223   : > { %457 = vrcp.f32 %v293_v47 }
 0x225   : > { %v452_v48 = vpop.eup %451 }
 0x226   : > { %v298_v49 = vmul.f32 %v452_v48, %v444_v36 }
 0x228   : > { %302 = vst.msk [vmem:[%s145_s6] sm:$0xff] %vm257_vm1, %v298_v49 }
 0x229   : > { %v454_v50 = vpop.eup %453 }
 0x22a   : > { %v456_v51 = vpop.eup %455  ;;  %v299_v52 = vmul.f32 %v454_v50, %v448_v39 }
 0x22b   : > { %v300_v53 = vmul.f32 %v456_v51, %v446_v38 }
 0x22c   : > { %303 = vst.msk [vmem:[%s145_s6 + $0x8] sm:$0xff] %vm257_vm1, %v299_v52 }
 0x22d   : > { %v458_v54 = vpop.eup %457  ;;  %304 = vst.msk [vmem:[%s145_s6 + $0x10] sm:$0xff] %vm257_vm1, %v300_v53 }
 0x22e   : > { %v301_v55 = vmul.f32 %v458_v54, %v450_v42 }
 0x230   : > { %305 = vst.msk [vmem:[%s145_s6 + $0x18] sm:$0xff] %vm257_vm1, %v301_v55 }
 0x231 PF: > { %s12_s9 = sadd.s32 1, %s465_s9  }
 0x232   : > { %p9_p4 = scmp.ge.s32.totalorder %s12_s9, 6  }
 0x234   :  { %11 = sbr.rel (!%p9_p4) target bundleno = 1 (0x1), region = 58 }

</bundles_post_ra>
